<compile_context>
chip_gen: v7x
topology: tpu7x:2x2x1
jax: 0.10.0
libtpu: 0.0.40
codegen_flags: <defaults>
</compile_context>

<pallas_src>
import jax
import jax.numpy as jnp
from jax.experimental import pallas as pl
from jax.experimental.pallas import tpu as pltpu


def _hbm_copy_kernel(x_hbm, o_hbm, sem):
    # Direct HBM -> HBM DMA of this grid step's contiguous chunk (row i of the
    # (num_chunks, chunk) view).  No VMEM staging, no vld/vst slots used.
    i = pl.program_id(0)
    cp = pltpu.make_async_copy(x_hbm.at[i], o_hbm.at[i], sem)
    cp.start()
    cp.wait()


def pallas_identity(x):
    """Identity pass over a tensor via a chunked HBM->HBM DMA Pallas kernel."""
    orig_shape = x.shape
    n = x.size
    # Two chunks so v7x's two TensorCores can each drive one DMA; fall back to
    # a single whole-array DMA when the element count is odd (still zero VMEM,
    # so no OOM hazard for large odd-sized inputs).
    num_chunks = 2 if (n >= 2 and n % 2 == 0) else 1
    chunk = n // num_chunks

    x2d = x.reshape(num_chunks, chunk)
    y2d = pl.pallas_call(
        _hbm_copy_kernel,
        out_shape=jax.ShapeDtypeStruct((num_chunks, chunk), x.dtype),
        grid_spec=pltpu.PrefetchScalarGridSpec(
            num_scalar_prefetch=0,
            grid=(num_chunks,),
            in_specs=[pl.BlockSpec(memory_space=pl.ANY)],
            out_specs=pl.BlockSpec(memory_space=pl.ANY),
            scratch_shapes=[pltpu.SemaphoreType.DMA(())],
        ),
        compiler_params=pltpu.CompilerParams(
            dimension_semantics=("parallel",),
        ),
    )(x2d)
    return y2d.reshape(orig_shape)


class Generator:
    """JAX/Pallas counterpart of the (empty) PyTorch Generator."""

    def __init__(self):
        # Reference __init__ defines no parameters.
        pass

    def forward(self):
        # TODO(synk): reference forward() is `pass` (returns None); there is no
        # generator architecture (convs/BN/upsampling) to translate.
        return None

    __call__ = forward


if __name__ == "__main__":
    key = jax.random.PRNGKey(0)
    # Small example tensor (NCHW) just to exercise the Pallas kernel path.
    x = jax.random.normal(key, (2, 4, 16, 16), dtype=jnp.float32)

    identity = jax.jit(pallas_identity)
    y = identity(x)
    jax.block_until_ready(y)
    assert y.shape == x.shape and y.dtype == x.dtype
    assert bool(jnp.allclose(y, x))

    # Faithful reproduction of the reference module's forward semantics.
    gen = Generator()
    assert gen.forward() is None

    print("KERNEL_OK")
</pallas_src>

<mosaic_0001>
module attributes {stable_mosaic.version = 11 : i64} {
  func.func @_hbm_copy_kernel(%arg0: i32, %arg1: memref<2x1024xf32, #tpu.memory_space<any>>, %arg2: memref<2x1024xf32, #tpu.memory_space<any>>, %arg3: memref<!tpu.dma_semaphore, #tpu.memory_space<semaphore_mem>>) attributes {dimension_semantics = [#tpu.dimension_semantics<parallel>], iteration_bounds = array<i64: 2>, scalar_prefetch = 0 : i64, scratch_operands = 1 : i64, tpu.core_type = #tpu.core_type<tc>, window_params = [{}, {}]} {
    %c0_i32 = arith.constant 0 : i32
    %0 = tpu.memref_slice %arg1[%arg0, %c0_i32] : memref<2x1024xf32, #tpu.memory_space<any>> -> memref<1x1024xf32, #tpu.memory_space<any>>
    %1 = tpu.memref_squeeze %0 : memref<1x1024xf32, #tpu.memory_space<any>> -> memref<1024xf32, #tpu.memory_space<any>>
    %c0_i32_0 = arith.constant 0 : i32
    %2 = tpu.memref_slice %arg2[%arg0, %c0_i32_0] : memref<2x1024xf32, #tpu.memory_space<any>> -> memref<1x1024xf32, #tpu.memory_space<any>>
    %3 = tpu.memref_squeeze %2 : memref<1x1024xf32, #tpu.memory_space<any>> -> memref<1024xf32, #tpu.memory_space<any>>
    tpu.enqueue_dma source(%1 : memref<1024xf32, #tpu.memory_space<any>>) target(%3 : memref<1024xf32, #tpu.memory_space<any>>) target_semaphore(%arg3 : memref<!tpu.dma_semaphore, #tpu.memory_space<semaphore_mem>>)
    %c0_i32_1 = arith.constant 0 : i32
    %4 = tpu.memref_slice %arg1[%arg0, %c0_i32_1] : memref<2x1024xf32, #tpu.memory_space<any>> -> memref<1x1024xf32, #tpu.memory_space<any>>
    %5 = tpu.memref_squeeze %4 : memref<1x1024xf32, #tpu.memory_space<any>> -> memref<1024xf32, #tpu.memory_space<any>>
    %c0_i32_2 = arith.constant 0 : i32
    %6 = tpu.memref_slice %arg2[%arg0, %c0_i32_2] : memref<2x1024xf32, #tpu.memory_space<any>> -> memref<1x1024xf32, #tpu.memory_space<any>>
    %7 = tpu.memref_squeeze %6 : memref<1x1024xf32, #tpu.memory_space<any>> -> memref<1024xf32, #tpu.memory_space<any>>
    tpu.wait_dma2 semaphore(%arg3 : memref<!tpu.dma_semaphore, #tpu.memory_space<semaphore_mem>>) src(%5 : memref<1024xf32, #tpu.memory_space<any>>) dst(%7 : memref<1024xf32, #tpu.memory_space<any>>)
    return
  }
}

</mosaic_0001>

<bundles_post_ra>
// kernel: pallas_identity.1
= control target key start
LH: loop header
LB: loop body
LE: loop exit
PB: predicated region body
PF: predicated region fallthrough
CT: control target
= control target key end

     0   :  { %s162_s6 = smov 0   ;;  %s173_s0 = inlined_call_operand.vmem [shape: f32[2,1024], index: 0, kind: input, shape index: {}]   ;;  %s174_s1 = inlined_call_operand.vmem [shape: f32[2,1024], index: 1, kind: output, shape index: {}]  }
   0x1 LB: > { %s13_s7 = sshrl.u32 %s150_s6, 1  ;;  %s14_s8 = sand.u32 1, %s150_s6   ;;  %s150_s6 = sphi %s162_s6, %s11_s6  }
   0x2   : > { %s132_s9 = sshll.u32 %s13_s7, 4 }
   0x3   : > { %s16_s10 = sadd.s32 %s132_s9, %s14_s8 }
   0x4   : > { %s17_s13 = scalar_lea.vmem %s173_s0, %s16_s10  ;;  %s18_s16 = scalar_lea.vmem %s174_s1, %s16_s10 }
   0x5   : > { %v36_v0 = vld [vmem:[%s17_s13] sm:$0x1]  ;;  %v38_v1 = vld [vmem:[%s17_s13 + $0x2] sm:$0x1]  ;;  %v40_v2 = vld [vmem:[%s17_s13 + $0x4] sm:$0x1] }
   0x6   : > { %37 = vst [vmem:[%s18_s16] sm:$0x1] %v36_v0  ;;  %39 = vst [vmem:[%s18_s16 + $0x2] sm:$0x1] %v38_v1  ;;  %v42_v3 = vld [vmem:[%s17_s13 + $0x6] sm:$0x1] }
   0x7   : > { %41 = vst [vmem:[%s18_s16 + $0x4] sm:$0x1] %v40_v2  ;;  %v44_v4 = vld [vmem:[%s17_s13 + $0x8] sm:$0x1]  ;;  %v46_v5 = vld [vmem:[%s17_s13 + $0xa] sm:$0x1] }
   0x8   : > { %43 = vst [vmem:[%s18_s16 + $0x6] sm:$0x1] %v42_v3  ;;  %45 = vst [vmem:[%s18_s16 + $0x8] sm:$0x1] %v44_v4  ;;  %v48_v6 = vld [vmem:[%s17_s13 + $0xc] sm:$0x1] }
   0x9   : > { %47 = vst [vmem:[%s18_s16 + $0xa] sm:$0x1] %v46_v5  ;;  %v50_v7 = vld [vmem:[%s17_s13 + $0xe] sm:$0x1]  ;;  %49 = vst [vmem:[%s18_s16 + $0xc] sm:$0x1] %v48_v6 }
   0xa   : > { %51 = vst [vmem:[%s18_s16 + $0xe] sm:$0x1] %v50_v7 }
   0xb   : > { %98 = vsyncadd [#allocation2], 128 }
   0xc   : > { %146 = dma.done.wait [#allocation2], 128 }
   0xd   : > { %147 = vsyncadd [#allocation2], 4294967168  ;;  %s11_s6 = sadd.s32 1, %s150_s6  }
   0xe   : > { %p8_p0 = scmp.ge.s32.totalorder %s11_s6, 2  }
  0x10   :  { %10 = sbr.rel (!%p8_p0) target bundleno = 1 (0x1), region = 72 }
  0x17   :  { %101 = vsyncmov [#allocation2] }
  0x1a   :  { %s102_s17 = vpop.sfrf %101 }
  0x1b   :  { %p133_p1 = scmp.ne.s32.totalorder %s102_s17, 0 }
  0x1d   :  { %106 = shalt.err (%p133_p1)  }

</bundles_post_ra>
